<compile_context>
chip_gen: v7x
topology: tpu7x:2x2x1
jax: 0.10.0
libtpu: 0.0.40
codegen_flags: <defaults>
</compile_context>

<pallas_src>
import functools
import math

import jax
import jax.numpy as jnp
from jax.experimental import pallas as pl
from jax.experimental.pallas import tpu as pltpu


def _pick_tile(dim, max_tile, granule, prefer_split=False):
    """Tile size for `dim`: granule-aligned and <= max_tile.

    Prefers an exact divisor of `dim` (no ragged last tile); otherwise the
    caller uses a cdiv grid and the ragged tile is masked in-kernel.  With
    prefer_split=True the tile is additionally capped so the axis gets >= 2
    grid steps (lets the "parallel" row axis shard across v7x's two cores).
    """
    if dim <= granule or (not prefer_split and dim <= max_tile):
        return dim                              # full extent is always legal
    limit = min(max_tile, dim)
    if prefer_split:
        limit = min(limit, max(granule, (dim + 1) // 2))
    limit = max(granule, (limit // granule) * granule)
    t = limit
    while t >= granule:
        if dim % t == 0:
            return t
        t -= granule
    return limit                                # ragged: cdiv grid + mask


def _label_smoothing_kl_kernel(x_ref, tgt_ref, out_ref, acc_ref, tacc_ref,
                               corr_ref, *,
                               block_rows, block_cols, total_rows, total_cols,
                               smoothing_value, confidence, ignore_index,
                               has_ignore_col, ignore_col, ignore_tile,
                               ent_base, ent_adjust, use_groups, v_ragged,
                               rows_ragged):
    """loss = Sum_rows [ Sum_c p*log(p) - Sum_c p*x ]  (analytic entropy).

    Per step we only accumulate two row partials:
      acc  += Sum over this vocab tile of x           (lane-group partials)
      tacc += Sum over this vocab tile of x[., tgt]   (via one cmp+sel)
    Weights (smoothing/confidence), the ignore-column correction, the
    `valid`-row mask and the entropy constant are applied once at finalize.
    """
    i = pl.program_id(0)
    j = pl.program_id(1)
    nj = pl.num_programs(1)

    @pl.when(j == 0)
    def _init():
        acc_ref[...] = jnp.zeros_like(acc_ref)
        tacc_ref[...] = jnp.zeros_like(tacc_ref)
        corr_ref[...] = jnp.zeros_like(corr_ref)

    x = x_ref[...].astype(jnp.float32)                  # (tb, tv) log-probs
    tgt = tgt_ref[...]                                  # (tb, 1) int32

    col = jax.lax.broadcasted_iota(jnp.int32, x.shape, 1)
    local_tgt = tgt - j * block_cols                    # (tb, 1)
    tgt_sel = jnp.where(col == local_tgt, x, jnp.float32(0.0))

    # Capture x[:, ignore_col] once, in the single tile that contains it,
    # via a static column slice (no full-tile select / cross-lane reduce).
    if has_ignore_col:
        @pl.when(j == ignore_tile)
        def _capture_ignore_col():
            lc = ignore_col - ignore_tile * block_cols  # compile-time int
            corr_ref[...] = x[:, lc:lc + 1]

    # Ragged last vocab tile: zero the out-of-range columns.  Only traced in
    # when V is not a multiple of the tile (correctness fallback path).
    if v_ragged:
        x = jnp.where(col < total_cols - j * block_cols, x, jnp.float32(0.0))

    if use_groups:
        # Reduce over static 128-wide lane groups into a (tb, 128) partial;
        # one small scratch RMW per step (no full-tile accumulator traffic).
        ngroups = block_cols // 128
        part = x[:, 0:128]
        tpart = tgt_sel[:, 0:128]
        for g in range(1, ngroups):
            lo = g * 128
            part = part + x[:, lo:lo + 128]
            tpart = tpart + tgt_sel[:, lo:lo + 128]
        acc_ref[...] = acc_ref[...] + part
        tacc_ref[...] = tacc_ref[...] + tpart
    else:
        # Small / non-128-aligned vocab (single vocab tile): direct row sums.
        acc_ref[...] = acc_ref[...] + jnp.sum(x, axis=1, keepdims=True)
        tacc_ref[...] = tacc_ref[...] + jnp.sum(tgt_sel, axis=1, keepdims=True)

    @pl.when(j == nj - 1)
    def _finalize():
        rowsum = jnp.sum(acc_ref[...], axis=1, keepdims=True)    # (tb, 1)
        x_tgt = jnp.sum(tacc_ref[...], axis=1, keepdims=True)    # (tb, 1)
        t = tgt_ref[...]
        valid = t != ignore_index

        # Sum_c p*x  =  s*rowsum + (c - s)*x_tgt  [- s*x_ignore_col if tgt!=ic]
        dot = (jnp.float32(smoothing_value) * rowsum
               + jnp.float32(confidence - smoothing_value) * x_tgt)
        ent = jnp.full(rowsum.shape, ent_base, jnp.float32)
        if has_ignore_col:
            on_ig = t == ignore_col
            dot = dot - jnp.where(on_ig, jnp.float32(0.0),
                                  jnp.float32(smoothing_value)) * corr_ref[...]
            ent = ent + jnp.where(on_ig, jnp.float32(ent_adjust),
                                  jnp.float32(0.0))

        keep = valid
        if rows_ragged:
            row = jax.lax.broadcasted_iota(jnp.int32, keep.shape, 0)
            keep = jnp.logical_and(keep, i * block_rows + row < total_rows)
        contrib = jnp.where(keep, ent - dot, jnp.float32(0.0))   # (tb, 1)
        total = jnp.sum(contrib)

        # Lane-dense (1, 8, 128) output block: scalar at [0,0,0], zeros else.
        r = jax.lax.broadcasted_iota(jnp.int32, out_ref.shape, 1)
        c = jax.lax.broadcasted_iota(jnp.int32, out_ref.shape, 2)
        out_ref[...] = jnp.where(jnp.logical_and(r == 0, c == 0), total,
                                 jnp.float32(0.0))


class LabelSmoothingLossPallas:
    """JAX/Pallas equivalent of the PyTorch LabelSmoothingLoss module."""

    def __init__(self, label_smoothing, tgt_vocab_size, ignore_index=-100,
                 block_rows=128, block_cols=8192):
        assert 0.0 < label_smoothing <= 1.0
        assert tgt_vocab_size > 2, "smoothing_value requires tgt_vocab_size > 2"
        self.ignore_index = int(ignore_index)
        self.tgt_vocab_size = int(tgt_vocab_size)
        self.smoothing_value = float(label_smoothing) / (tgt_vocab_size - 2)
        self.confidence = 1.0 - float(label_smoothing)
        self.block_rows = int(block_rows)
        self.block_cols = int(block_cols)

        # PyTorch's `one_hot[self.ignore_index] = 0` with negative indexing.
        ic = (self.ignore_index if self.ignore_index >= 0
              else self.tgt_vocab_size + self.ignore_index)
        self.has_ignore_col = 0 <= ic < self.tgt_vocab_size
        self.ignore_col = ic
        # TODO(synk): PyTorch raises at construction if ignore_index maps
        # outside [0, V); here the column zeroing is silently skipped instead.

        # Analytical Sum p*log(p) pieces (0*log(0) treated as 0, matching
        # PyTorch's xlogy-based kl_div when confidence == 0).
        s, c = self.smoothing_value, self.confidence
        s_logs = s * math.log(s) if s > 0.0 else 0.0
        c_logc = c * math.log(c) if c > 0.0 else 0.0
        if self.has_ignore_col:
            self.ent_base = c_logc + (self.tgt_vocab_size - 2) * s_logs
            self.ent_adjust = s_logs        # when target lands on ignore_col
        else:
            self.ent_base = c_logc + (self.tgt_vocab_size - 1) * s_logs
            self.ent_adjust = 0.0

    def __call__(self, output, target):
        """output: [B, V] log-probs (f32 or bf16); target: [B] int."""
        B, V = output.shape
        assert V == self.tgt_vocab_size
        assert jnp.issubdtype(output.dtype, jnp.floating)

        tb = _pick_tile(B, self.block_rows, 8, prefer_split=True)
        tv = _pick_tile(V, self.block_cols, 128)
        ni = -(-B // tb)
        nj = -(-V // tv)
        rows_ragged = (B % tb) != 0
        v_ragged = (V % tv) != 0
        use_groups = (tv % 128 == 0)
        accw = 128 if use_groups else 1
        ignore_tile = (self.ignore_col // tv) if self.has_ignore_col else 0

        target2d = target.astype(jnp.int32).reshape(B, 1)

        kernel = functools.partial(
            _label_smoothing_kl_kernel,
            block_rows=tb, block_cols=tv, total_rows=B, total_cols=V,
            smoothing_value=self.smoothing_value, confidence=self.confidence,
            ignore_index=self.ignore_index,
            has_ignore_col=self.has_ignore_col, ignore_col=self.ignore_col,
            ignore_tile=ignore_tile, ent_base=self.ent_base,
            ent_adjust=self.ent_adjust, use_groups=use_groups,
            v_ragged=v_ragged, rows_ragged=rows_ragged,
        )

        cost = pl.CostEstimate(
            flops=6 * B * V,
            transcendentals=0,
            bytes_accessed=B * V * output.dtype.itemsize + B * 4
                           + ni * 8 * 128 * 4,
        )

        partials = pl.pallas_call(
            kernel,
            out_shape=jax.ShapeDtypeStruct((ni, 8, 128), jnp.float32),
            grid_spec=pltpu.PrefetchScalarGridSpec(
                num_scalar_prefetch=0,
                grid=(ni, nj),
                in_specs=[
                    pl.BlockSpec((tb, tv), lambda i, j: (i, j)),   # log-probs
                    pl.BlockSpec((tb, 1), lambda i, j: (i, 0)),    # target
                ],
                out_specs=pl.BlockSpec((1, 8, 128), lambda i, j: (i, 0, 0)),
                scratch_shapes=[
                    pltpu.VMEM((tb, accw), jnp.float32),   # row-sum partials
                    pltpu.VMEM((tb, accw), jnp.float32),   # target-col partials
                    pltpu.VMEM((tb, 1), jnp.float32),      # x[:, ignore_col]
                ],
            ),
            compiler_params=pltpu.CompilerParams(
                dimension_semantics=("parallel", "arbitrary"),
                vmem_limit_bytes=32 * 1024 * 1024,
            ),
            cost_estimate=cost,
        )(output, target2d)

        return jnp.sum(partials)


def _reference(output, target, *, smoothing_value, confidence, ignore_col,
               ignore_index):
    """Pure-JAX reference mirroring the PyTorch module."""
    B, V = output.shape
    col = jnp.arange(V)[None, :]
    tgt = target.astype(jnp.int32)[:, None]
    p = jnp.full((B, V), smoothing_value, jnp.float32)
    if ignore_col is not None:
        p = jnp.where(col == ignore_col, 0.0, p)
    p = jnp.where(col == tgt, confidence, p)
    p = jnp.where(tgt == ignore_index, 0.0, p)
    x = output.astype(jnp.float32)
    safe_p = jnp.where(p > 0, p, 1.0)
    return jnp.sum(jnp.where(p > 0, p * (jnp.log(safe_p) - x), 0.0))


if __name__ == "__main__":
    key = jax.random.PRNGKey(0)

    def run_case(case_key, *, B, V, dtype, label_smoothing, ignore_index,
                 target_edits, block_rows, block_cols):
        k1, k2 = jax.random.split(case_key)
        logits = jax.random.normal(k1, (B, V), dtype=jnp.float32)
        logp = jax.nn.log_softmax(logits, axis=-1).astype(dtype)
        target = jax.random.randint(k2, (B,), 0, V, dtype=jnp.int32)
        for idx, val in target_edits:
            target = target.at[idx].set(val)

        mod = LabelSmoothingLossPallas(label_smoothing, V, ignore_index,
                                       block_rows=block_rows,
                                       block_cols=block_cols)
        loss = mod(logp, target)
        jax.block_until_ready(loss)

        ref = _reference(logp, target,
                         smoothing_value=mod.smoothing_value,
                         confidence=mod.confidence,
                         ignore_col=mod.ignore_col if mod.has_ignore_col else None,
                         ignore_index=mod.ignore_index)
        assert jnp.allclose(loss, ref, rtol=2e-3, atol=5e-2), (loss, ref)

    ks = jax.random.split(key, 4)
    # 1) 4x4 grid, non-negative ignore_index, one ignored row, even tiling.
    run_case(ks[0], B=32, V=1024, dtype=jnp.float32, label_smoothing=0.1,
             ignore_index=3, target_edits=[(2, 3)],
             block_rows=8, block_cols=256)
    # 2) default ignore_index=-100 (ignore column = 924); one target lands
    #    exactly on the ignore column.
    run_case(ks[1], B=16, V=1024, dtype=jnp.float32, label_smoothing=0.3,
             ignore_index=-100, target_edits=[(5, 924)],
             block_rows=8, block_cols=256)
    # 3) bf16 log-probs, ragged rows (B=20, tb=8) and a ragged last vocab tile
    #    (V=1216, tv=512); ignore column (1116) lives in the ragged tile; one
    #    ignored row and one target on the ignore column.
    run_case(ks[2], B=20, V=1216, dtype=jnp.bfloat16, label_smoothing=0.2,
             ignore_index=-100, target_edits=[(0, -100), (7, 1116)],
             block_rows=8, block_cols=512)
    # 4) small non-128-aligned vocab (V=200): single full-extent vocab tile,
    #    non-group accumulation path, ragged rows, one ignored row.
    run_case(ks[3], B=10, V=200, dtype=jnp.float32, label_smoothing=0.15,
             ignore_index=-100, target_edits=[(3, -100)],
             block_rows=128, block_cols=8192)

    print("KERNEL_OK")
</pallas_src>

<mosaic_0001>
module attributes {stable_mosaic.version = 11 : i64} {
  func.func @_label_smoothing_kl_kernel(%arg0: i32, %arg1: i32, %arg2: memref<8x256xf32, #tpu.memory_space<vmem>>, %arg3: memref<8x1xi32, #tpu.memory_space<vmem>>, %arg4: memref<1x8x128xf32, #tpu.memory_space<vmem>>, %arg5: memref<8x128xf32, #tpu.memory_space<vmem>>, %arg6: memref<8x128xf32, #tpu.memory_space<vmem>>, %arg7: memref<8x1xf32, #tpu.memory_space<vmem>>) attributes {dimension_semantics = [#tpu.dimension_semantics<parallel>, #tpu.dimension_semantics<arbitrary>], iteration_bounds = array<i64: 4, 4>, scalar_prefetch = 0 : i64, scratch_operands = 3 : i64, tpu.core_type = #tpu.core_type<tc>, window_params = [{transform_indices = @transform_0, window_bounds = array<i64: 8, 256>}, {transform_indices = @transform_1, window_bounds = array<i64: 8, 1>}, {transform_indices = @transform_2, window_bounds = array<i64: 1, 8, 128>}]} {
    %c0_i32 = arith.constant 0 : i32
    %0 = arith.cmpi eq, %arg1, %c0_i32 : i32
    %1 = arith.extui %0 : i1 to i32
    %c0_i32_0 = arith.constant 0 : i32
    %2 = arith.cmpi ne, %1, %c0_i32_0 : i32
    scf.if %2 {
      %cst_15 = arith.constant 0.000000e+00 : f32
      %31 = vector.broadcast %cst_15 : f32 to vector<8x128xf32>
      %c0_16 = arith.constant 0 : index
      %c0_17 = arith.constant 0 : index
      %32 = vector.load %arg5[%c0_16, %c0_17] : memref<8x128xf32, #tpu.memory_space<vmem>>, vector<8x128xf32>
      tpu.vector_store %arg5[%c0_16, %c0_17], %31 {strides = array<i32>} : memref<8x128xf32, #tpu.memory_space<vmem>>, vector<8x128xf32>,
      %cst_18 = arith.constant 0.000000e+00 : f32
      %33 = vector.broadcast %cst_18 : f32 to vector<8x128xf32>
      %c0_19 = arith.constant 0 : index
      %c0_20 = arith.constant 0 : index
      %34 = vector.load %arg6[%c0_19, %c0_20] : memref<8x128xf32, #tpu.memory_space<vmem>>, vector<8x128xf32>
      tpu.vector_store %arg6[%c0_19, %c0_20], %33 {strides = array<i32>} : memref<8x128xf32, #tpu.memory_space<vmem>>, vector<8x128xf32>,
      %cst_21 = arith.constant 0.000000e+00 : f32
      %35 = vector.broadcast %cst_21 : f32 to vector<8x1xf32>
      %c0_22 = arith.constant 0 : index
      %c0_23 = arith.constant 0 : index
      %36 = vector.load %arg7[%c0_22, %c0_23] : memref<8x1xf32, #tpu.memory_space<vmem>>, vector<8x1xf32>
      tpu.vector_store %arg7[%c0_22, %c0_23], %35 {strides = array<i32>} : memref<8x1xf32, #tpu.memory_space<vmem>>, vector<8x1xf32>,
    } else {
    }
    %c0 = arith.constant 0 : index
    %c0_1 = arith.constant 0 : index
    %3 = vector.load %arg2[%c0, %c0_1] : memref<8x256xf32, #tpu.memory_space<vmem>>, vector<8x256xf32>
    %c0_2 = arith.constant 0 : index
    %c0_3 = arith.constant 0 : index
    %4 = vector.load %arg3[%c0_2, %c0_3] : memref<8x1xi32, #tpu.memory_space<vmem>>, vector<8x1xi32>
    %5 = tpu.iota {dimensions = array<i32: 1>} : vector<8x256xi32>
    %c256_i32 = arith.constant 256 : i32
    %6 = arith.muli %arg1, %c256_i32 : i32
    %7 = vector.broadcast %6 : i32 to vector<8x1xi32>
    %8 = arith.subi %4, %7 : vector<8x1xi32>
    %9 = vector.broadcast %8 : vector<8x1xi32> to vector<8x256xi32>
    %10 = arith.cmpi eq, %5, %9 : vector<8x256xi32>
    %cst = arith.constant 0.000000e+00 : f32
    %11 = vector.broadcast %cst : f32 to vector<8x256xf32>
    %12 = arith.select %10, %3, %11 : vector<8x256xi1>, vector<8x256xf32>
    %c0_i32_4 = arith.constant 0 : i32
    %13 = arith.cmpi eq, %arg1, %c0_i32_4 : i32
    %14 = arith.extui %13 : i1 to i32
    %c0_i32_5 = arith.constant 0 : i32
    %15 = arith.cmpi ne, %14, %c0_i32_5 : i32
    scf.if %15 {
      %31 = vector.extract_strided_slice %3 {offsets = [0, 3], sizes = [8, 1], strides = [1, 1]} : vector<8x256xf32> to vector<8x1xf32>
      %c0_15 = arith.constant 0 : index
      %c0_16 = arith.constant 0 : index
      %32 = vector.load %arg7[%c0_15, %c0_16] : memref<8x1xf32, #tpu.memory_space<vmem>>, vector<8x1xf32>
      tpu.vector_store %arg7[%c0_15, %c0_16], %31 {strides = array<i32>} : memref<8x1xf32, #tpu.memory_space<vmem>>, vector<8x1xf32>,
    } else {
    }
    %16 = vector.extract_strided_slice %3 {offsets = [0, 0], sizes = [8, 128], strides = [1, 1]} : vector<8x256xf32> to vector<8x128xf32>
    %17 = vector.extract_strided_slice %12 {offsets = [0, 0], sizes = [8, 128], strides = [1, 1]} : vector<8x256xf32> to vector<8x128xf32>
    %18 = vector.extract_strided_slice %3 {offsets = [0, 128], sizes = [8, 128], strides = [1, 1]} : vector<8x256xf32> to vector<8x128xf32>
    %19 = arith.addf %16, %18 : vector<8x128xf32>
    %20 = vector.extract_strided_slice %12 {offsets = [0, 128], sizes = [8, 128], strides = [1, 1]} : vector<8x256xf32> to vector<8x128xf32>
    %21 = arith.addf %17, %20 : vector<8x128xf32>
    %c0_6 = arith.constant 0 : index
    %c0_7 = arith.constant 0 : index
    %22 = vector.load %arg5[%c0_6, %c0_7] : memref<8x128xf32, #tpu.memory_space<vmem>>, vector<8x128xf32>
    %23 = arith.addf %22, %19 : vector<8x128xf32>
    %c0_8 = arith.constant 0 : index
    %c0_9 = arith.constant 0 : index
    %24 = vector.load %arg5[%c0_8, %c0_9] : memref<8x128xf32, #tpu.memory_space<vmem>>, vector<8x128xf32>
    tpu.vector_store %arg5[%c0_8, %c0_9], %23 {strides = array<i32>} : memref<8x128xf32, #tpu.memory_space<vmem>>, vector<8x128xf32>,
    %c0_10 = arith.constant 0 : index
    %c0_11 = arith.constant 0 : index
    %25 = vector.load %arg6[%c0_10, %c0_11] : memref<8x128xf32, #tpu.memory_space<vmem>>, vector<8x128xf32>
    %26 = arith.addf %25, %21 : vector<8x128xf32>
    %c0_12 = arith.constant 0 : index
    %c0_13 = arith.constant 0 : index
    %27 = vector.load %arg6[%c0_12, %c0_13] : memref<8x128xf32, #tpu.memory_space<vmem>>, vector<8x128xf32>
    tpu.vector_store %arg6[%c0_12, %c0_13], %26 {strides = array<i32>} : memref<8x128xf32, #tpu.memory_space<vmem>>, vector<8x128xf32>,
    %c3_i32 = arith.constant 3 : i32
    %28 = arith.cmpi eq, %arg1, %c3_i32 : i32
    %29 = arith.extui %28 : i1 to i32
    %c0_i32_14 = arith.constant 0 : i32
    %30 = arith.cmpi ne, %29, %c0_i32_14 : i32
    scf.if %30 {
      %c0_15 = arith.constant 0 : index
      %c0_16 = arith.constant 0 : index
      %31 = vector.load %arg5[%c0_15, %c0_16] : memref<8x128xf32, #tpu.memory_space<vmem>>, vector<8x128xf32>
      %cst_17 = arith.constant dense<0.000000e+00> : vector<8xf32>
      %32 = vector.multi_reduction <add>, %31, %cst_17 [1] : vector<8x128xf32> to vector<8xf32>
      %33 = vector.shape_cast %32 : vector<8xf32> to vector<8x1xf32>
      %c0_18 = arith.constant 0 : index
      %c0_19 = arith.constant 0 : index
      %34 = vector.load %arg6[%c0_18, %c0_19] : memref<8x128xf32, #tpu.memory_space<vmem>>, vector<8x128xf32>
      %cst_20 = arith.constant dense<0.000000e+00> : vector<8xf32>
      %35 = vector.multi_reduction <add>, %34, %cst_20 [1] : vector<8x128xf32> to vector<8xf32>
      %36 = vector.shape_cast %35 : vector<8xf32> to vector<8x1xf32>
      %c0_21 = arith.constant 0 : index
      %c0_22 = arith.constant 0 : index
      %37 = vector.load %arg3[%c0_21, %c0_22] : memref<8x1xi32, #tpu.memory_space<vmem>>, vector<8x1xi32>
      %c3_i32_23 = arith.constant 3 : i32
      %38 = vector.broadcast %c3_i32_23 : i32 to vector<8x1xi32>
      %39 = arith.cmpi ne, %37, %38 : vector<8x1xi32>
      %cst_24 = arith.constant 9.78473617E-5 : f32
      %40 = vector.broadcast %cst_24 : f32 to vector<8x1xf32>
      %41 = arith.mulf %40, %33 : vector<8x1xf32>
      %cst_25 = arith.constant 0.899902164 : f32
      %42 = vector.broadcast %cst_25 : f32 to vector<8x1xf32>
      %43 = arith.mulf %42, %36 : vector<8x1xf32>
      %44 = arith.addf %41, %43 : vector<8x1xf32>
      %cst_26 = arith.constant -1.0180347 : f32
      %45 = vector.broadcast %cst_26 : f32 to vector<8x1xf32>
      %c3_i32_27 = arith.constant 3 : i32
      %46 = vector.broadcast %c3_i32_27 : i32 to vector<8x1xi32>
      %47 = arith.cmpi eq, %37, %46 : vector<8x1xi32>
      %cst_28 = arith.constant 0.000000e+00 : f32
      %cst_29 = arith.constant 9.78473617E-5 : f32
      %48 = vector.broadcast %cst_28 : f32 to vector<8x1xf32>
      %49 = vector.broadcast %cst_29 : f32 to vector<8x1xf32>
      %50 = arith.select %47, %48, %49 : vector<8x1xi1>, vector<8x1xf32>
      %c0_30 = arith.constant 0 : index
      %c0_31 = arith.constant 0 : index
      %51 = vector.load %arg7[%c0_30, %c0_31] : memref<8x1xf32, #tpu.memory_space<vmem>>, vector<8x1xf32>
      %52 = arith.mulf %50, %51 : vector<8x1xf32>
      %53 = arith.subf %44, %52 : vector<8x1xf32>
      %cst_32 = arith.constant -9.03336797E-4 : f32
      %cst_33 = arith.constant 0.000000e+00 : f32
      %54 = vector.broadcast %cst_32 : f32 to vector<8x1xf32>
      %55 = vector.broadcast %cst_33 : f32 to vector<8x1xf32>
      %56 = arith.select %47, %54, %55 : vector<8x1xi1>, vector<8x1xf32>
      %57 = arith.addf %45, %56 : vector<8x1xf32>
      %58 = arith.subf %57, %53 : vector<8x1xf32>
      %cst_34 = arith.constant 0.000000e+00 : f32
      %59 = vector.broadcast %cst_34 : f32 to vector<8x1xf32>
      %60 = arith.select %39, %58, %59 : vector<8x1xi1>, vector<8x1xf32>
      %61 = vector.shape_cast %60 : vector<8x1xf32> to vector<1x8x1xf32>
      %cst_35 = arith.constant dense<0.000000e+00> : vector<1xf32>
      %62 = vector.multi_reduction <add>, %61, %cst_35 [1, 2] : vector<1x8x1xf32> to vector<1xf32>
      %63 = vector.shape_cast %62 : vector<1xf32> to vector<1x1x1xf32>
      %64 = vector.extract %63[0, 0, 0] : f32 from vector<1x1x1xf32>
      %65 = tpu.iota {dimensions = array<i32: 1>} : vector<1x8x128xi32>
      %66 = tpu.iota {dimensions = array<i32: 2>} : vector<1x8x128xi32>
      %c0_i32_36 = arith.constant 0 : i32
      %67 = vector.broadcast %c0_i32_36 : i32 to vector<1x8x128xi32>
      %68 = arith.cmpi eq, %65, %67 : vector<1x8x128xi32>
      %c0_i32_37 = arith.constant 0 : i32
      %69 = vector.broadcast %c0_i32_37 : i32 to vector<1x8x128xi32>
      %70 = arith.cmpi eq, %66, %69 : vector<1x8x128xi32>
      %71 = arith.andi %68, %70 : vector<1x8x128xi1>
      %cst_38 = arith.constant 0.000000e+00 : f32
      %72 = vector.broadcast %64 : f32 to vector<1x8x128xf32>
      %73 = vector.broadcast %cst_38 : f32 to vector<1x8x128xf32>
      %74 = arith.select %71, %72, %73 : vector<1x8x128xi1>, vector<1x8x128xf32>
      %c0_39 = arith.constant 0 : index
      %c0_40 = arith.constant 0 : index
      %c0_41 = arith.constant 0 : index
      %75 = vector.load %arg4[%c0_39, %c0_40, %c0_41] : memref<1x8x128xf32, #tpu.memory_space<vmem>>, vector<1x8x128xf32>
      tpu.vector_store %arg4[%c0_39, %c0_40, %c0_41], %74 {strides = array<i32>} : memref<1x8x128xf32, #tpu.memory_space<vmem>>, vector<1x8x128xf32>,
    } else {
    }
    return
  }
  func.func @transform_0(%arg0: i32, %arg1: i32) -> (i32, i32) {
    %c0_i32 = arith.constant 0 : i32
    return %arg0, %arg1 : i32, i32
  }
  func.func @transform_1(%arg0: i32, %arg1: i32) -> (i32, i32) {
    %c0_i32 = arith.constant 0 : i32
    %c0_i32_0 = arith.constant 0 : i32
    return %arg0, %c0_i32 : i32, i32
  }
  func.func @transform_2(%arg0: i32, %arg1: i32) -> (i32, i32, i32) {
    %c0_i32 = arith.constant 0 : i32
    %c0_i32_0 = arith.constant 0 : i32
    %c0_i32_1 = arith.constant 0 : i32
    return %arg0, %c0_i32, %c0_i32_0 : i32, i32, i32
  }
}

</mosaic_0001>

<bundles_post_ra>
// kernel: tpu_custom_call.1
= control target key start
LH: loop header
LB: loop body
LE: loop exit
PB: predicated region body
PF: predicated region fallthrough
CT: control target
= control target key end

     0   :  { %7 = vsyncpa [#allocation6], 0  ;;  %s936_s0 = inlined_call_operand.hbm [shape: f32[32,1024], index: 0, kind: input, shape index: {}]   ;;  %s937_s1 = inlined_call_operand.vmem [shape: s32[32,1], index: 1, kind: input, shape index: {}]   ;;  %s938_s2 = inlined_call_operand.hbm [shape: f32[4,8,128], index: 2, kind: output, shape index: {}]  }
   0x1   :  { %9 = vsyncpa [#allocation6 + $0x1], 0 }
   0x2   :  { %10 = vsyncpa [#allocation7], 0 }
   0x3   :  { %12 = vsyncpa [#allocation7 + $0x1], 0  ;;  %s694_s9 = smov 0   ;;  %s696_s10 = smov 0  }
   0x4   :  { %s698_s11 = smov 0   ;;  %s700_s12 = smov 0  }
   0x5   :  { %s702_s13 = smov 0   ;;  %s704_s14 = smov 0  }
   0x6   :  { %s706_s15 = smov 0   ;;  %s708_s16 = smov 0  }
   0x7   :  { %s710_s17 = smov 0   ;;  %s712_s18 = smov 0  }
   0x8   :  { %s714_s19 = smov 0  }
   0x9 LB: > { %s388_s20 = sadd.s32 4294967295, %s670_s19   ;;  %s389_s21 = sadd.s32 4294967294, %s670_s19   ;;  %s670_s19 = sphi %s714_s19, %s18_s19   ;;  %s666_s18 = sphi %s712_s18, %s964_s18   ;;  %s662_s17 = sphi %s710_s17, %s963_s17   ;;  %s658_s16 = sphi %s708_s16, %s962_s16   ;;  %s654_s15 = sphi %s706_s15, %s961_s15   ;;  %s650_s14 = sphi %s704_s14, %s960_s14   ;;  %s646_s13 = sphi %s702_s13, %s959_s13   ;;  %s642_s12 = sphi %s700_s12, %s958_s12   ;;  %s638_s11 = sphi %s698_s11, %s957_s11   ;;  %s634_s10 = sphi %s696_s10, %s956_s10   ;;  %s630_s9 = sphi %s694_s9, %s955_s9  }
   0xa   : > { %s27_s22 = sadd.s32 1, %s662_s17  ;;  %s30_s23 = sadd.s32 1, %s666_s18 }
   0xb   : > { %p28_p0 = scmp.ge.s32.totalorder %s27_s22, 4  ;;  %s39_s24 = sadd.s32 1, %s650_s14 }
   0xc   : > { %p46_p1 = scmp.ne.s32.totalorder %s650_s14, %s646_s13  ;;  %p47_p2 = scmp.eq.s32.totalorder %s670_s19, 0 }
   0xd   : > { %s966_s22 = smov (%p28_p0, %s27_s22), 0  ;;  %s968_s23 = smov (!%p28_p0, %s30_s23), %s666_s18 }
   0xe   : > { %942 = sst [smem:[#allocation11_spill]] %s966_s22  ;;  %s35_s25 = ssub.s32 %s662_s17, %s966_s22 }
   0xf   : > { %p760_p3 = por %p47_p2, %p46_p1  ;;  %p32_p4 = scmp.ge.s32.totalorder %s968_s23, 4 }
  0x10   : > { %p52_p5 = scmp.ne.s32.totalorder %s646_s13, %s642_s12  ;;  %p53_p6 = scmp.eq.s32.totalorder %s388_s20, 0 }
  0x11   : > { %s91_s27 = sadd.s32 1, %s638_s11  ;;  %s970_s23 = smov (%p32_p4, %s968_s23), 0 }
  0x12   : > { %944 = sst [smem:[#allocation12_spill]] %s970_s23  ;;  %p768_p7 = por %p53_p6, %p52_p5 }
  0x13   : > { %p101_p8 = scmp.ne.s32.totalorder %s638_s11, %s634_s10  ;;  %s34_s29 = ssub.s32 %s666_s18, %s970_s23 }
  0x14   : > { %p102_p9 = scmp.eq.s32.totalorder %s388_s20, 15  ;;  %s36_s30 = sor.u32 %s35_s25, %s34_s29 }
  0x15   : > { %p89_p10 = scmp.eq.s32.totalorder %s34_s29, 0  ;;  %p37_p11 = scmp.eq.s32.totalorder %s36_s30, 0 }
  0x16   : > { %p776_p12 = por %p102_p9, %p101_p8  ;;  %p107_p13 = scmp.ne.s32.totalorder %s634_s10, %s630_s9 }
  0x17   : > { %s781_s4 = scalar_select %p89_p10, %s638_s11, %s91_s27  }
  0x18   : > { %s946_s3 = scalar_select %p776_p12, 1, 0 }
  0x19   : > { %s784_s5 = scalar_select %p37_p11, %s650_s14, %s39_s24  }
  0x1a   : > { %p108_p0 = scmp.eq.s32.totalorder %s389_s21, 15  ;;  %p422_p1 = scmp.lt.s32.totalorder %s670_s19, 16 }
  0x1b   : > { %s128_s7 = sand.u32 1, %s650_s14   ;;  %s393_s12 = sshll.u32 %s662_s17, 1 }
  0x1c   : > { %p789_p2 = por %p108_p0, %p107_p13  ;;  %s392_s8 = sshll.u32 %s128_s7, 4 }
  0x1d   : > { %s394_s20 = sshll.u32 %s666_s18, 3  ;;  %s132_s25 = scalar_lea.vmem [#allocation5], %s392_s8 }
  0x1e   : > { %s947_s6 = scalar_select %p789_p2, 1, 0 }
  0x1f   : > { %s142_s29 = sshll.u32 %s132_s25, 4  ;;  %s138_s30 = sadd.s32 %s394_s20, %s393_s12  ;;  %s796_s29 = int_to_ptr.vmem [resolvable:$true] %s142_s29 }
  0x20   : > { %s395_s24 = sshll.u32 %s138_s30, 7  ;;  %p800_p4 = pnand %p422_p1, %p760_p3 }
  0x21   : > { %s807_s22 = scalar_lea.hbm %s936_s0, %s395_s24  ;;  %s129_s8 = scalar_lea.sflag [#allocation6], %s128_s7 }
  0x22   : > { %s518_s12 = scalar_lea.hbm %s807_s22, 256  ;;  %p520_p3 = pneg %p800_p4 }
  0x23   : > { %p519_p8 = scmp.ne.s32.totalorder %s807_s22, %s518_s12  ;;  %s523_s20 = scalar_lea.hbm %s936_s0, 4096 }
  0x24   : > { %p524_p11 = scmp.lt.u32.totalorder %s807_s22, %s936_s0  ;;  %p525_p13 = scmp.lt.u32.totalorder %s523_s20, %s518_s12 }
  0x25   : > { %p521_p9 = pnand %p520_p3, %p519_p8  ;;  %p527_p1 = scmp.lt.u32.totalorder %s518_s12, %s807_s22 }
  0x26   : > { %p526_p0 = por %p525_p13, %p524_p11 }
  0x27   : > { %p522_p10 = pneg %p521_p9 }
  0x28   : > { %p528_p5 = por %p527_p1, %p526_p0 }
  0x2a   : > { %p529_p6 = pnand %p528_p5, %p522_p10 }
  0x2c   : > { %532 = shalt.err (!%p529_p6)
}
  0x2d   : > { %s533_s7 = scalar_lea.vmem %s796_s29, 256  ;;  %s672_s24 = smov [#allocation5]  }
  0x2e   : > { %p534_p8 = scmp.ne.s32.totalorder %s796_s29, %s533_s7  ;;  %s538_s21 = sshll.u32 %s672_s24, 4  ;;  %s539_s21 = int_to_ptr.vmem [resolvable:$false] %s538_s21 }
  0x2f   : > { %s540_s23 = scalar_lea.vmem %s539_s21, 512  ;;  %p541_p12 = scmp.lt.s32.totalorder %s796_s29, %s539_s21 }
  0x30   : > { %p536_p9 = pnand %p534_p8, %p520_p3  ;;  %p542_p11 = scmp.lt.s32.totalorder %s540_s23, %s533_s7 }
  0x32   : > { %p537_p2 = pneg %p536_p9  ;;  %p543_p13 = por %p542_p11, %p541_p12 }
  0x34   : > { %p544_p0 = pnand %p543_p13, %p537_p2 }
  0x36   : > { %547 = shalt.err (!%p544_p0)
}
  0x37   : > { %417 = dma.hbm_to_vmem [thread:$0]  (!%p800_p4), %s807_s22, 256, %s796_s29, %s129_s8  }
  0x38   : > { %p949_p5 = scmp.lt.s32.totalorder %s670_s19, 17  ;;  %p950_p6 = scmp.ge.s32.totalorder %s670_s19, 1 }
  0x3a   : > { %p155_p3 = pnand %p950_p6, %p949_p5 }
  0x3b   : > { %s160_s12 = sand.u32 (!%p155_p3), 1, %s646_s13  }
  0x3c   : > { %158 = sbr.rel (%p155_p3) target bundleno = 615 (0x267), region = 28  ;;  %s841_s26 = sshll.u32 (!%p155_p3), %s160_s12, 4 }
  0x3d   : > { %s161_s20 = scalar_lea.sflag (!%p155_p3), [#allocation6], %s160_s12  ;;  %s164_s25 = scalar_lea.vmem (!%p155_p3), [#allocation5], %s841_s26 }
  0x43   : > { %621 = dma.done.wait (%p768_p7), %s161_s20, 256  }
  0x44   : > { %623 = vsyncadd (%p768_p7), %s161_s20, 4294967040  ;;  %s186_s22 = sand.u32 1, %s634_s10   ;;  %p190_p12 = scmp.lt.s32.totalorder %s658_s16, 3 }
  0x45   : > { %s852_s29 = sshll.u32 %s186_s22, 3  ;;  %p400_p7 = scmp.ne.s32.totalorder %s654_s15, 0 }
  0x46   : > { %s191_s27 = scalar_select %p190_p12, %s658_s16, 3 }
  0x47   : > { %s188_s21 = scalar_lea.vmem [#allocation8], %s852_s29  ;;  %197 = sbr.rel (%p400_p7) target bundleno = 78 (0x4e), region = 36  ;;  %vm200_vm0 = vcmask (!%p400_p7), 7168   ;;  %v673_v0 = vmov (!%p400_p7), 0.0  }
  0x48   : > { %s399_s8 = sshll.u32 %s191_s27, 3  ;;  %198 = vst [vmem:[#allocation2] sm:$0xff] (!%p400_p7), %v673_v0  ;;  %199 = vst [vmem:[#allocation3] sm:$0xff] (!%p400_p7), %v673_v0 }
  0x49   : > { %s858_s24 = scalar_lea.vmem %s937_s1, %s399_s8  ;;  %201 = vst.msk [vmem:[#allocation4] sm:$0xff] (!%p400_p7), %vm200_vm0, %v673_v0 }
  0x4e PF: > { %v204_v1 = vld [vmem:[%s858_s24] sm:$0xff]  ;;  %s401_s28 = sshll.u32 %s654_s15, 8  ;;  %v674_v2 = vmov 0   ;;  %v205_v5 = vlaneseq  ;;  %v202_v8 = vld [vmem:[%s164_s25] sm:$0xff]  ;;  %s675_s23 = smov (!%p400_p7), 125   ;;  %vm225_vm3 = vcmask (!%p400_p7), 7168  }
  0x4f   : > { %517 = vset.pattern.permute.xlu0 %v674_v2  ;;  %v209_v3 = vstv %s401_s28  ;;  %v203_v9 = vld [vmem:[%s164_s25 + $0x8] sm:$0xff] }
  0x50   : > { %v210_v4 = vsub.s32 %v204_v1, %v209_v3  ;;  %v206_v6 = vand.u32 127, %v205_v5 }
  0x52   : > { %212 = vperm.xlu0 %517, %v210_v4   ;;  %v207_v7 = vadd.s32 128, %v206_v6 }
  0x56   : > { %222 = vrot.lane.b32.xlu0 (!%p400_p7), %v202_v8, %s675_s23 }
  0xcd   : > { %220 = sbr.rel (%p400_p7) target bundleno = 215 (0xd7), region = 40 }
  0xd1   : > { %v213_v10 = vpop.permute.xlu0 %212 }
  0xd2   : > { %vm214_vm1 = vcmp.eq.s32.totalorder %v206_v6, %v213_v10  ;;  %vm215_vm2 = vcmp.eq.s32.totalorder %v207_v7, %v213_v10 }
  0xd3   : > { %v216_v11 = vsel %vm214_vm1, %v202_v8, 0.0  ;;  %v217_v12 = vsel %vm215_vm2, %v203_v9, 0.0 }
  0xd5   : > { %v223_v13 = vpop.permute.xlu0 %222 }
  0xd6   : > { %226 = vst.msk [vmem:[#allocation4] sm:$0xff] %vm225_vm3, %v223_v13 }
  0xd7 PF: > { %v227_v14 = vadd.f32 %v203_v9, %v202_v8  ;;  %v229_v15 = vld [vmem:[#allocation2] sm:$0xff]  ;;  %v228_v16 = vadd.f32 %v217_v12, %v216_v11  ;;  %v232_v17 = vld [vmem:[#allocation3] sm:$0xff]  ;;  %p403_p2 = scmp.ne.s32.totalorder %s654_s15, 3 }
  0xd8   : > { %v245_v22 = vld [vmem:[%s858_s24] sm:$0xff] (!%p403_p2)  ;;  %v676_v24 = vmov (!%p403_p2), 9.784736e-05   ;;  %v677_v28 = vmov (!%p403_p2), 0.0   ;;  %vm259_vm6 = vcmask (!%p403_p2), 7168   ;;  %v271_v46 = vshrl.u32 (!%p403_p2), %v205_v5, 7 }
  0xd9   : > { %v230_v18 = vadd.f32 %v229_v15, %v227_v14  ;;  %v233_v19 = vadd.f32 %v232_v17, %v228_v16  ;;  %238 = sbr.rel (%p403_p2) target bundleno = 590 (0x24e), region = 44  ;;  %vm250_vm4 = vcmp.eq.s32.totalorder (!%p403_p2), %v245_v22, 3  ;;  %vm246_vm5 = vcmp.ne.s32.totalorder (!%p403_p2), %v245_v22, 3 }
  0xda   : > { %v251_v25 = vsel (!%p403_p2), %vm250_vm4, 0.0, %v676_v24  ;;  %v255_v29 = vsel (!%p403_p2), %vm250_vm4, -0.0009033368, %v677_v28  ;;  %vm272_vm7 = vcmp.eq.s32.totalorder (!%p403_p2), %v271_v46, 0  ;;  %vm273_vm8 = vcmp.eq.s32.totalorder (!%p403_p2), %v206_v6, 0 }
  0xdb   : > { %231 = vst [vmem:[#allocation2] sm:$0xff] %v230_v18  ;;  %234 = vst [vmem:[#allocation3] sm:$0xff] %v233_v19  ;;  %v256_v34 = vadd.f32 (!%p403_p2), -1.0180347, %v255_v29 }
  0xdc   : > { %vm274_vm9 = vmand (!%p403_p2), %vm272_vm7, %vm273_vm8 }
  0xdd   : > { %v252_v26 = vld [vmem:[#allocation4] sm:$0xff] (!%p403_p2) }
  0xde   : > { %v253_v32 = vmul.f32 (!%p403_p2), %v252_v26, %v251_v25 }
  0xe2   : > { %v239_v20 = vld [vmem:[#allocation2] sm:$0xff]  ;;  %v242_v21 = vld [vmem:[#allocation3] sm:$0xff] }
  0xe3   : > { %240 = vadd.xlane.f32.xlu0 %v239_v20 }
  0xe7   : > { %243 = vadd.xlane.f32.xlu0 %v242_v21 }
 0x170   : > { %v241_v23 = vpop.xlane.xlu0 %240 }
 0x171   : > { %v247_v30 = vmul.f32 9.784736e-05, %v241_v23 }
 0x174   : > { %v244_v27 = vpop.xlane.xlu0 %243 }
 0x175   : > { %v248_v31 = vmul.f32 0.89990216, %v244_v27 }
 0x177   : > { %v249_v33 = vadd.f32 %v248_v31, %v247_v30 }
 0x179   : > { %v254_v35 = vsub.f32 %v249_v33, %v253_v32 }
 0x17b   : > { %v257_v36 = vsub.f32 %v256_v34, %v254_v35 }
 0x17d   : > { %v258_v37 = vsel %vm246_vm5, %v257_v36, 0.0 }
 0x17e   : > { %v260_v38 = vsel %vm259_vm6, %v258_v37, 0.0 }
 0x17f   : > { %261 = vadd.xlane.f32.xlu1 %v260_v38 }
 0x20c   : > { %v262_v39 = vpop.xlane.xlu1 %261 }
 0x20d   : > { %v263_v40 = vrot.slane %v262_v39, 4 }
 0x20f   : > { %v264_v41 = vadd.f32 %v263_v40, %v262_v39 }
 0x211   : > { %v265_v42 = vrot.slane %v264_v41, 2 }
 0x213   : > { %v266_v43 = vadd.f32 %v265_v42, %v264_v41 }
 0x215   : > { %v267_v44 = vrot.slane %v266_v43, 1 }
 0x217   : > { %v268_v45 = vadd.f32 %v267_v44, %v266_v43 }
 0x219   : > { %408 = vpush %v268_v45 }
 0x24a   : > { %s409_s15 = spop %408 }
 0x24b   : > { %v275_v47 = vstv %s409_s15 }
 0x24c   : > { %v276_v48 = vsel %vm274_vm9, %v275_v47, 0.0 }
 0x24d   : > { %277 = vst [vmem:[%s188_s21] sm:$0xff] %v276_v48 }
 0x24e PF: > { %s405_s12 = sshll.u32 %s658_s16, 7  ;;  %s292_s27 = sshll.u32 %s188_s21, 4  ;;  %s293_s27 = int_to_ptr.vmem [resolvable:$true] %s292_s27 }
 0x24f   : > { %s876_s25 = scalar_lea.hbm %s938_s2, %s405_s12  ;;  %s279_s8 = scalar_lea.sflag [#allocation7], %s186_s22 }
 0x250   : > { %s548_s30 = scalar_lea.vmem %s293_s27, 128  ;;  %p951_p10 = scmp.ne.s32.totalorder %s946_s3, 0 }
 0x251   : > { %p549_p4 = scmp.ne.s32.totalorder %s293_s27, %s548_s30  ;;  %s678_s7 = smov [#allocation8]  }
 0x252   : > { %s552_s24 = sshll.u32 %s678_s7, 4  ;;  %s553_s24 = int_to_ptr.vmem [resolvable:$false] %s552_s24 }
 0x253   : > { %p550_p1 = pnand %p549_p4, %p951_p10  ;;  %s554_s28 = scalar_lea.vmem %s553_s24, 256 }
 0x254   : > { %p555_p9 = scmp.lt.s32.totalorder %s293_s27, %s553_s24  ;;  %p556_p11 = scmp.lt.s32.totalorder %s554_s28, %s548_s30 }
 0x255   : > { %p551_p8 = pneg %p550_p1 }
 0x256   : > { %p557_p13 = por %p556_p11, %p555_p9 }
 0x258   : > { %p558_p0 = pnand %p557_p13, %p551_p8 }
 0x25a   : > { %561 = shalt.err (!%p558_p0)
}
 0x25b   : > { %s562_s16 = scalar_lea.hbm %s876_s25, 128  ;;  %s566_s21 = scalar_lea.hbm %s938_s2, 512 }
 0x25c   : > { %p563_p5 = scmp.ne.s32.totalorder %s876_s25, %s562_s16  ;;  %p567_p12 = scmp.lt.u32.totalorder %s876_s25, %s938_s2 }
 0x25d   : > { %p568_p7 = scmp.lt.u32.totalorder %s566_s21, %s562_s16  ;;  %p570_p4 = scmp.lt.u32.totalorder %s562_s16, %s876_s25 }
 0x25e   : > { %p564_p6 = pnand %p563_p5, %p951_p10 }
 0x25f   : > { %p569_p2 = por %p568_p7, %p567_p12 }
 0x260   : > { %p565_p3 = pneg %p564_p6 }
 0x261   : > { %p571_p1 = por %p570_p4, %p569_p2 }
 0x263   : > { %p572_p8 = pnand %p571_p1, %p565_p3 }
 0x265   : > { %575 = shalt.err (!%p572_p8)
}
 0x266   : > { %412 = dma.vmem_to_hbm [thread:$0]  (%p951_p10), %s293_s27, 128, %s876_s25, %s279_s8  }
 0x267 PF: > { %p423_p9 = scmp.ge.s32.totalorder %s670_s19, 2  ;;  %s304_s12 = sand.u32 1, %s630_s9  }
 0x268   : > { %p952_p11 = scmp.ne.s32.totalorder %s947_s6, 0  ;;  %s305_s26 = scalar_lea.sflag [#allocation7], %s304_s12 }
 0x26a   : > { %p419_p13 = pnand %p423_p9, %p952_p11 }
 0x26c   : > { %625 = dma.done.wait (!%p419_p13), %s305_s26, 128  }
 0x26d   : > { %627 = vsyncadd (!%p419_p13), %s305_s26, 4294967168  ;;  %s18_s19 = sadd.s32 1, %s670_s19   ;;  %s953_s3 = sld [smem:[#allocation11_spill]] }
 0x26e   : > { %p15_p0 = scmp.ge.s32.totalorder %s18_s19, 18   ;;  %s954_s20 = sld [smem:[#allocation12_spill]] }
 0x26f   : > { %s955_s9 = smov %s634_s10  ;;  %s956_s10 = smov %s638_s11 }
 0x270   : > { %s957_s11 = smov %s781_s4  ;;  %s958_s12 = smov %s646_s13 }
 0x271   : > { %s959_s13 = smov %s650_s14  ;;  %s960_s14 = smov %s784_s5 }
 0x272   : > { %s961_s15 = smov %s662_s17  ;;  %s962_s16 = smov %s666_s18 }
 0x273   : > { %s963_s17 = smov %s953_s3  ;;  %17 = sbr.rel (!%p15_p0) target bundleno = 9 (0x9), region = 88 }
 0x274   : > { %s964_s18 = smov %s954_s20 }
 0x27a   :  { %310 = vsyncpa [#allocation6], 1 }
 0x27b   :  { %312 = vsyncpa [#allocation6 + $0x1], 1 }
 0x27c   :  { %313 = vsyncpa [#allocation7], 1 }
 0x27d   :  { %315 = vsyncpa [#allocation7 + $0x1], 1 }

</bundles_post_ra>
